<compile_context>
chip_gen: v5e
topology: v5e:2x2
jax: 0.10.0
libtpu: 0.0.40
codegen_flags: <defaults>
</compile_context>

<pallas_src>
import functools

import jax
import jax.numpy as jnp
from jax.experimental import pallas as pl
from jax.experimental.pallas import tpu as pltpu

HIDDEN = 128
DEFAULT_BLOCK_B = 2048        # batch-tile upper bound; amortizes ~0.35us/step overhead
SMALL_BATCH_FALLBACK = 256    # below this, plain XLA dots beat the pallas_call launch cost


def _round_up(n, m):
    return ((n + m - 1) // m) * m


def _cdiv(a, b):
    return -(-a // b)


def _choose_tiles(B, block_b):
    """Balanced batch tiling (padding < 8 rows per block); >= 2 blocks once B >= 512
    so both v7x TensorCores get work (cheap no-op on single-TC v5e/v6e)."""
    n_blocks = max(1, _cdiv(B, block_b))
    if n_blocks == 1 and B >= 512:
        n_blocks = 2
    tb = _round_up(_cdiv(B, n_blocks), 8)
    Bp = n_blocks * tb
    return tb, n_blocks, Bp


def actor_kernel(x_ref, w1_ref, b1_ref, w2_ref, b2_ref, w3_ref, b3_ref, out_ref):
    # fc1 + ReLU  (bf16 MXU inputs, f32 accumulate / elementwise)
    x = x_ref[...].astype(jnp.bfloat16)
    h1 = jnp.dot(x, w1_ref[...], preferred_element_type=jnp.float32) + b1_ref[...]
    h1 = jnp.maximum(h1, 0.0)

    # fc2 + ReLU
    h2 = jnp.dot(h1.astype(jnp.bfloat16), w2_ref[...],
                 preferred_element_type=jnp.float32) + b2_ref[...]
    h2 = jnp.maximum(h2, 0.0)

    # fc3 (logits) in f32: N = action_dim is tiny so the MXU cost is unchanged, and
    # the logits then match the f32 PyTorch Actor before the exp.
    logits = jnp.dot(h2, w3_ref[...], preferred_element_type=jnp.float32) + b3_ref[...]

    # Numerically stable softmax over dim=1. EUP approx reciprocal + one Newton
    # refinement step (2 cheap VALU ops) -> rows sum to 1 to ~f32 precision.
    m = jnp.max(logits, axis=1, keepdims=True)
    e = jnp.exp(logits - m)
    denom = jnp.sum(e, axis=1, keepdims=True)
    r = pl.reciprocal(denom, approx=True)
    r = r * (2.0 - denom * r)
    out_ref[...] = (e * r).astype(out_ref.dtype)


def _actor_forward_pallas(x, prepared, block_b):
    w1b, b1, w2b, b2, w3, b3 = prepared
    B, S = x.shape
    A = w3.shape[1]

    tb, n_blocks, Bp = _choose_tiles(B, block_b)
    if Bp != B:
        x = jnp.pad(x, ((0, Bp - B), (0, 0)))

    # Constant index_maps: the ~37 KB of parameters are DMA'd once and stay resident
    # in VMEM across all grid steps.
    # (pl.Buffered(1) on these constant specs would shave a small double-buffer
    #  allocation; intentionally skipped — marginal, and default pipelining is known-good.)
    const = lambda shape: pl.BlockSpec(shape, lambda i: tuple(0 for _ in shape))

    flops = 2 * Bp * (S * HIDDEN + HIDDEN * HIDDEN + HIDDEN * A)
    bytes_accessed = (
        Bp * S * 4                                   # x (f32 in HBM)
        + Bp * A * 4                                 # output probs
        + (S * HIDDEN + HIDDEN * HIDDEN) * 2         # bf16 fc1/fc2 weights
        + HIDDEN * A * 4                             # f32 fc3 weight
        + (HIDDEN + HIDDEN + A) * 4                  # f32 biases
    )

    out = pl.pallas_call(
        actor_kernel,
        out_shape=jax.ShapeDtypeStruct((Bp, A), jnp.float32),
        grid_spec=pltpu.PrefetchScalarGridSpec(
            num_scalar_prefetch=0,
            grid=(n_blocks,),
            in_specs=[
                pl.BlockSpec((tb, S), lambda i: (i, 0)),   # x: walk the batch axis
                const(w1b.shape), const(b1.shape),          # params: resident in VMEM
                const(w2b.shape), const(b2.shape),
                const(w3.shape), const(b3.shape),
            ],
            out_specs=pl.BlockSpec((tb, A), lambda i: (i, 0)),
        ),
        compiler_params=pltpu.CompilerParams(
            dimension_semantics=("parallel",),   # megacore shard across TCs on v7x
        ),
        cost_estimate=pl.CostEstimate(
            flops=flops,
            transcendentals=Bp * (A + 1),
            bytes_accessed=bytes_accessed,
        ),
    )(x, w1b, b1, w2b, b2, w3, b3)

    return out[:B] if Bp != B else out


def _actor_forward_xla(x, prepared):
    """Small-batch latency path: below ~256 rows, pallas_call launch + weight DMA
    dominates, so plain fused XLA dots are as fast or faster."""
    w1b, b1, w2b, b2, w3, b3 = prepared
    h1 = jnp.maximum(
        jnp.dot(x.astype(jnp.bfloat16), w1b, preferred_element_type=jnp.float32) + b1, 0.0)
    h2 = jnp.maximum(
        jnp.dot(h1.astype(jnp.bfloat16), w2b, preferred_element_type=jnp.float32) + b2, 0.0)
    logits = jnp.dot(h2, w3, preferred_element_type=jnp.float32) + b3
    return jax.nn.softmax(logits, axis=1)


@functools.partial(jax.jit, static_argnames=("block_b", "force_pallas"))
def actor_forward(x, prepared, *, block_b=DEFAULT_BLOCK_B, force_pallas=False):
    """x: [B, state_dim] float32 -> action_prob: [B, action_dim] float32."""
    B = x.shape[0]
    if force_pallas or B >= SMALL_BATCH_FALLBACK:
        return _actor_forward_pallas(x, prepared, block_b)
    return _actor_forward_xla(x, prepared)


def init_actor_params(key, state_dim, action_dim):
    """Deterministic init mimicking nn.Linear default (U[-1/sqrt(fan_in), +1/sqrt(fan_in)]).

    Weights stored transposed vs PyTorch: [in_features, out_features].
    Biases stored as [1, out_features] for clean 2-D broadcasting on TPU.
    """
    def linear(key, fan_in, fan_out):
        kw, kb = jax.random.split(key)
        bound = 1.0 / jnp.sqrt(jnp.float32(fan_in))
        w = jax.random.uniform(kw, (fan_in, fan_out), jnp.float32, -bound, bound)
        b = jax.random.uniform(kb, (1, fan_out), jnp.float32, -bound, bound)
        return w, b

    k1, k2, k3 = jax.random.split(key, 3)
    w1, b1 = linear(k1, state_dim, HIDDEN)
    w2, b2 = linear(k2, HIDDEN, HIDDEN)
    w3, b3 = linear(k3, HIDDEN, action_dim)
    return (w1, b1, w2, b2, w3, b3)


def prepare_actor_params(params):
    """One-time (outside jit) bf16 cast of the MXU-facing weights; fc3 stays f32.
    Call once after init / weight update; pass the result to actor_forward."""
    w1, b1, w2, b2, w3, b3 = params
    return (w1.astype(jnp.bfloat16), b1,
            w2.astype(jnp.bfloat16), b2,
            w3, b3)


def actor_reference(x, params):
    """Pure-JAX reference matching the kernel's precision path
    (bf16 fc1/fc2 inputs, f32 accumulate, f32 fc3 + softmax)."""
    w1, b1, w2, b2, w3, b3 = params
    h1 = jnp.maximum(
        jnp.dot(x.astype(jnp.bfloat16), w1.astype(jnp.bfloat16),
                preferred_element_type=jnp.float32) + b1, 0.0)
    h2 = jnp.maximum(
        jnp.dot(h1.astype(jnp.bfloat16), w2.astype(jnp.bfloat16),
                preferred_element_type=jnp.float32) + b2, 0.0)
    logits = jnp.dot(h2, w3, preferred_element_type=jnp.float32) + b3
    return jax.nn.softmax(logits, axis=1)


if __name__ == "__main__":
    key = jax.random.PRNGKey(0)
    k_params, k_x1, k_x2 = jax.random.split(key, 3)

    state_dim, action_dim = 16, 6
    params = init_actor_params(k_params, state_dim, action_dim)
    prepared = prepare_actor_params(params)   # bf16 weight copies, made once outside jit

    # --- Small rollout-style batch (module-spec shape). Force the Pallas path so the
    #     kernel itself is exercised; default dispatch would take the XLA fallback. ---
    x_small = jax.random.normal(k_x1, (2, state_dim), jnp.float32)
    p_small = jax.block_until_ready(actor_forward(x_small, prepared, force_pallas=True))
    ref_small = actor_reference(x_small, params)
    assert p_small.shape == (2, action_dim)
    assert jnp.allclose(p_small, ref_small, atol=2e-3, rtol=2e-3)
    assert jnp.allclose(jnp.sum(p_small, axis=1), 1.0, atol=1e-3)

    # Default dispatch at tiny batch -> XLA fallback (latency path).
    p_small_xla = jax.block_until_ready(actor_forward(x_small, prepared))
    assert jnp.allclose(p_small_xla, ref_small, atol=2e-3, rtol=2e-3)

    # --- Larger batch: exercises balanced tiling (B=520 -> 2 blocks of 264 rows,
    #     only 8 padded rows total) and the multi-step "parallel" grid. ---
    B = 520
    x_big = jax.random.normal(k_x2, (B, state_dim), jnp.float32)
    p_big = jax.block_until_ready(actor_forward(x_big, prepared))
    ref_big = actor_reference(x_big, params)
    assert p_big.shape == (B, action_dim)
    assert jnp.allclose(p_big, ref_big, atol=2e-3, rtol=2e-3)
    assert jnp.allclose(jnp.sum(p_big, axis=1), 1.0, atol=1e-3)

    print("KERNEL_OK")
</pallas_src>

<mosaic_0001>
module attributes {stable_mosaic.version = 11 : i64} {
  func.func @actor_kernel(%arg0: i32, %arg1: memref<8x16xf32, #tpu.memory_space<vmem>>, %arg2: memref<16x128xbf16, #tpu.memory_space<vmem>>, %arg3: memref<1x128xf32, #tpu.memory_space<vmem>>, %arg4: memref<128x128xbf16, #tpu.memory_space<vmem>>, %arg5: memref<1x128xf32, #tpu.memory_space<vmem>>, %arg6: memref<128x6xf32, #tpu.memory_space<vmem>>, %arg7: memref<1x6xf32, #tpu.memory_space<vmem>>, %arg8: memref<8x6xf32, #tpu.memory_space<vmem>>) attributes {dimension_semantics = [#tpu.dimension_semantics<parallel>], iteration_bounds = array<i64: 1>, scalar_prefetch = 0 : i64, scratch_operands = 0 : i64, tpu.core_type = #tpu.core_type<tc>, window_params = [{transform_indices = @transform_0, window_bounds = array<i64: 8, 16>}, {pipeline_mode = #tpu.pipeline_mode<synchronous>, transform_indices = @transform_1, window_bounds = array<i64: 16, 128>}, {pipeline_mode = #tpu.pipeline_mode<synchronous>, transform_indices = @transform_2, window_bounds = array<i64: 1, 128>}, {pipeline_mode = #tpu.pipeline_mode<synchronous>, transform_indices = @transform_3, window_bounds = array<i64: 128, 128>}, {pipeline_mode = #tpu.pipeline_mode<synchronous>, transform_indices = @transform_4, window_bounds = array<i64: 1, 128>}, {pipeline_mode = #tpu.pipeline_mode<synchronous>, transform_indices = @transform_5, window_bounds = array<i64: 128, 6>}, {pipeline_mode = #tpu.pipeline_mode<synchronous>, transform_indices = @transform_6, window_bounds = array<i64: 1, 6>}, {transform_indices = @transform_7, window_bounds = array<i64: 8, 6>}]} {
    %c0 = arith.constant 0 : index
    %c0_0 = arith.constant 0 : index
    %0 = vector.load %arg1[%c0, %c0_0] : memref<8x16xf32, #tpu.memory_space<vmem>>, vector<8x16xf32>
    %1 = arith.truncf %0 : vector<8x16xf32> to vector<8x16xbf16>
    %c0_1 = arith.constant 0 : index
    %c0_2 = arith.constant 0 : index
    %2 = vector.load %arg2[%c0_1, %c0_2] : memref<16x128xbf16, #tpu.memory_space<vmem>>, vector<16x128xbf16>
    %cst = arith.constant dense<0.000000e+00> : vector<8x128xf32>
    %3 = tpu.matmul %1, %2, %cst {dimension_numbers = #tpu.dot_dimension_numbers<[1], [0], [0], [1], [0, 0, 1, 1], [], []>} : vector<8x16xbf16>, vector<16x128xbf16>, vector<8x128xf32> -> vector<8x128xf32>
    %c0_3 = arith.constant 0 : index
    %c0_4 = arith.constant 0 : index
    %4 = vector.load %arg3[%c0_3, %c0_4] : memref<1x128xf32, #tpu.memory_space<vmem>>, vector<1x128xf32>
    %5 = vector.broadcast %4 : vector<1x128xf32> to vector<8x128xf32>
    %6 = arith.addf %3, %5 : vector<8x128xf32>
    %cst_5 = arith.constant 0.000000e+00 : f32
    %7 = vector.broadcast %cst_5 : f32 to vector<8x128xf32>
    %8 = arith.maximumf %6, %7 : vector<8x128xf32>
    %9 = arith.truncf %8 : vector<8x128xf32> to vector<8x128xbf16>
    %c0_6 = arith.constant 0 : index
    %c0_7 = arith.constant 0 : index
    %10 = vector.load %arg4[%c0_6, %c0_7] : memref<128x128xbf16, #tpu.memory_space<vmem>>, vector<128x128xbf16>
    %cst_8 = arith.constant dense<0.000000e+00> : vector<8x128xf32>
    %11 = tpu.matmul %9, %10, %cst_8 {dimension_numbers = #tpu.dot_dimension_numbers<[1], [0], [0], [1], [0, 0, 1, 1], [], []>} : vector<8x128xbf16>, vector<128x128xbf16>, vector<8x128xf32> -> vector<8x128xf32>
    %c0_9 = arith.constant 0 : index
    %c0_10 = arith.constant 0 : index
    %12 = vector.load %arg5[%c0_9, %c0_10] : memref<1x128xf32, #tpu.memory_space<vmem>>, vector<1x128xf32>
    %13 = vector.broadcast %12 : vector<1x128xf32> to vector<8x128xf32>
    %14 = arith.addf %11, %13 : vector<8x128xf32>
    %cst_11 = arith.constant 0.000000e+00 : f32
    %15 = vector.broadcast %cst_11 : f32 to vector<8x128xf32>
    %16 = arith.maximumf %14, %15 : vector<8x128xf32>
    %c0_12 = arith.constant 0 : index
    %c0_13 = arith.constant 0 : index
    %17 = vector.load %arg6[%c0_12, %c0_13] : memref<128x6xf32, #tpu.memory_space<vmem>>, vector<128x6xf32>
    %cst_14 = arith.constant dense<0.000000e+00> : vector<8x6xf32>
    %18 = tpu.matmul %16, %17, %cst_14 {dimension_numbers = #tpu.dot_dimension_numbers<[1], [0], [0], [1], [0, 0, 1, 1], [], []>} : vector<8x128xf32>, vector<128x6xf32>, vector<8x6xf32> -> vector<8x6xf32>
    %c0_15 = arith.constant 0 : index
    %c0_16 = arith.constant 0 : index
    %19 = vector.load %arg7[%c0_15, %c0_16] : memref<1x6xf32, #tpu.memory_space<vmem>>, vector<1x6xf32>
    %20 = vector.broadcast %19 : vector<1x6xf32> to vector<8x6xf32>
    %21 = arith.addf %18, %20 : vector<8x6xf32>
    %cst_17 = arith.constant dense<0xFF800000> : vector<8xf32>
    %22 = vector.multi_reduction <maximumf>, %21, %cst_17 [1] : vector<8x6xf32> to vector<8xf32>
    %23 = vector.shape_cast %22 : vector<8xf32> to vector<8x1xf32>
    %24 = vector.broadcast %23 : vector<8x1xf32> to vector<8x6xf32>
    %25 = arith.subf %21, %24 : vector<8x6xf32>
    %26 = math.exp %25 : vector<8x6xf32>
    %cst_18 = arith.constant dense<0.000000e+00> : vector<8xf32>
    %27 = vector.multi_reduction <add>, %26, %cst_18 [1] : vector<8x6xf32> to vector<8xf32>
    %28 = vector.shape_cast %27 : vector<8xf32> to vector<8x1xf32>
    %29 = tpu.reciprocal %28 {approx = true} : vector<8x1xf32> -> vector<8x1xf32>
    %30 = arith.mulf %28, %29 : vector<8x1xf32>
    %cst_19 = arith.constant 2.000000e+00 : f32
    %31 = vector.broadcast %cst_19 : f32 to vector<8x1xf32>
    %32 = arith.subf %31, %30 : vector<8x1xf32>
    %33 = arith.mulf %29, %32 : vector<8x1xf32>
    %34 = vector.broadcast %33 : vector<8x1xf32> to vector<8x6xf32>
    %35 = arith.mulf %26, %34 : vector<8x6xf32>
    %c0_20 = arith.constant 0 : index
    %c0_21 = arith.constant 0 : index
    %36 = vector.load %arg8[%c0_20, %c0_21] : memref<8x6xf32, #tpu.memory_space<vmem>>, vector<8x6xf32>
    tpu.vector_store %arg8[%c0_20, %c0_21], %35 {strides = array<i32>} : memref<8x6xf32, #tpu.memory_space<vmem>>, vector<8x6xf32>,
    return
  }
  func.func @transform_0(%arg0: i32) -> (i32, i32) {
    %c0_i32 = arith.constant 0 : i32
    %c0_i32_0 = arith.constant 0 : i32
    return %arg0, %c0_i32 : i32, i32
  }
  func.func @transform_1(%arg0: i32) -> (i32, i32) {
    %c0_i32 = arith.constant 0 : i32
    %c0_i32_0 = arith.constant 0 : i32
    %c0_i32_1 = arith.constant 0 : i32
    return %c0_i32, %c0_i32_0 : i32, i32
  }
  func.func @transform_2(%arg0: i32) -> (i32, i32) {
    %c0_i32 = arith.constant 0 : i32
    %c0_i32_0 = arith.constant 0 : i32
    %c0_i32_1 = arith.constant 0 : i32
    return %c0_i32, %c0_i32_0 : i32, i32
  }
  func.func @transform_3(%arg0: i32) -> (i32, i32) {
    %c0_i32 = arith.constant 0 : i32
    %c0_i32_0 = arith.constant 0 : i32
    %c0_i32_1 = arith.constant 0 : i32
    return %c0_i32, %c0_i32_0 : i32, i32
  }
  func.func @transform_4(%arg0: i32) -> (i32, i32) {
    %c0_i32 = arith.constant 0 : i32
    %c0_i32_0 = arith.constant 0 : i32
    %c0_i32_1 = arith.constant 0 : i32
    return %c0_i32, %c0_i32_0 : i32, i32
  }
  func.func @transform_5(%arg0: i32) -> (i32, i32) {
    %c0_i32 = arith.constant 0 : i32
    %c0_i32_0 = arith.constant 0 : i32
    %c0_i32_1 = arith.constant 0 : i32
    return %c0_i32, %c0_i32_0 : i32, i32
  }
  func.func @transform_6(%arg0: i32) -> (i32, i32) {
    %c0_i32 = arith.constant 0 : i32
    %c0_i32_0 = arith.constant 0 : i32
    %c0_i32_1 = arith.constant 0 : i32
    return %c0_i32, %c0_i32_0 : i32, i32
  }
  func.func @transform_7(%arg0: i32) -> (i32, i32) {
    %c0_i32 = arith.constant 0 : i32
    %c0_i32_0 = arith.constant 0 : i32
    return %arg0, %c0_i32 : i32, i32
  }
}

</mosaic_0001>

<bundles_post_ra>
// kernel: actor_forward.1
= control target key start
LH: loop header
LB: loop body
LE: loop exit
PB: predicated region body
PF: predicated region fallthrough
CT: control target
= control target key end

     0   :  { %vm41_vm0 = vcmask 130048   ;;  %vm182_vm1 = vcmask 48128   ;;  %s388_s1 = inlined_call_operand.vmem [shape: bf16[16,128], index: 1, kind: input, shape index: {}]   ;;  %s389_s0 = inlined_call_operand.vmem [shape: f32[8,16], index: 0, kind: input, shape index: {}]   ;;  %s390_s3 = inlined_call_operand.vmem [shape: bf16[128,128], index: 3, kind: input, shape index: {}]   ;;  %s391_s2 = inlined_call_operand.vmem [shape: f32[1,128], index: 2, kind: input, shape index: {}]   ;;  %s392_s4 = inlined_call_operand.vmem [shape: f32[1,128], index: 4, kind: input, shape index: {}]   ;;  %s393_s5 = inlined_call_operand.vmem [shape: f32[128,6], index: 5, kind: input, shape index: {}]   ;;  %s394_s6 = inlined_call_operand.vmem [shape: f32[1,6], index: 6, kind: input, shape index: {}]   ;;  %s395_s7 = inlined_call_operand.vmem [shape: f32[8,6], index: 7, kind: output, shape index: {}]  }
   0x1   :  { %v239_v0 = vld [vmem:[%s388_s1] sm:$0xff]  ;;  %v247_v2 = vld [vmem:[%s390_s3 + $0x38] sm:$0xff]  ;;  %v246_v4 = vld [vmem:[%s390_s3 + $0x30] sm:$0xff] }
   0x2   :  { %v27_v1 = vld [vmem:[%s389_s0] sm:$0xff]  ;;  %52 = vmatpush.bf16.msra.mxu0 %v239_v0  ;;  %128 = vmatpush.bf16.msra.mxu1 %v247_v2  ;;  %v245_v5 = vld [vmem:[%s390_s3 + $0x28] sm:$0xff]  ;;  %v243_v7 = vld [vmem:[%s390_s3 + $0x18] sm:$0xff] }
   0x3   :  { %v28_v3 = vpack.c.bf16 %v27_v1, %v27_v1  ;;  %v244_v6 = vld [vmem:[%s390_s3 + $0x20] sm:$0xff]  ;;  %v242_v8 = vld [vmem:[%s390_s3 + $0x10] sm:$0xff]  ;;  %v241_v9 = vld [vmem:[%s390_s3 + $0x8] sm:$0xff] }
   0x4   :  { %v240_v10 = vld [vmem:[%s390_s3] sm:$0xff]  ;;  %v157_v11 = vld [vmem:[%s393_s5 + $0x78] sm:$0xff]  ;;  %v156_v12 = vld [vmem:[%s393_s5 + $0x70] sm:$0xff] }
   0x5   :  { %206 = vmatmul.msk.bf16.vlgmr.msra.gmra.mxu0 %vm41_vm0, %v28_v3  ;;  %162 = vmatpush.msra.mxu2 %v157_v11  ;;  %v155_v13 = vld [vmem:[%s393_s5 + $0x68] sm:$0xff]  ;;  %v154_v14 = vld [vmem:[%s393_s5 + $0x60] sm:$0xff]  ;;  %v153_v15 = vld [vmem:[%s393_s5 + $0x58] sm:$0xff] }
   0x6   :  { %129 = vmatpush.bf16.msra.mxu1 %v246_v4  ;;  %v152_v16 = vld [vmem:[%s393_s5 + $0x50] sm:$0xff]  ;;  %v151_v17 = vld [vmem:[%s393_s5 + $0x48] sm:$0xff]  ;;  %v150_v18 = vld [vmem:[%s393_s5 + $0x40] sm:$0xff] }
   0x7   :  { %163 = vmatpush.msra.mxu2 %v156_v12  ;;  %v149_v19 = vld [vmem:[%s393_s5 + $0x38] sm:$0xff]  ;;  %v148_v20 = vld [vmem:[%s393_s5 + $0x30] sm:$0xff]  ;;  %v147_v21 = vld [vmem:[%s393_s5 + $0x28] sm:$0xff] }
   0x8   :  { %v146_v22 = vld [vmem:[%s393_s5 + $0x20] sm:$0xff]  ;;  %v145_v24 = vld [vmem:[%s393_s5 + $0x18] sm:$0xff]  ;;  %v144_v30 = vld [vmem:[%s393_s5 + $0x10] sm:$0xff] }
   0x9   :  { %164 = vmatpush.msra.mxu2 %v155_v13  ;;  %v248_v23 = vld [vmem:[%s391_s2] ss:$0 sm:$0xff]  ;;  %v143_v31 = vld [vmem:[%s393_s5 + $0x8] sm:$0xff] }
   0xa   :  { %130 = vmatpush.bf16.msra.mxu1 %v245_v5  ;;  %v142_v32 = vld [vmem:[%s393_s5] sm:$0xff] }
   0xb   :  { %165 = vmatpush.msra.mxu2 %v154_v14  ;;  %v249_v33 = vld [vmem:[%s392_s4] ss:$0 sm:$0xff] }
   0xc   :  { %v250_v38 = vld [vmem:[%s394_s6] ss:$0 sm:$0xff] }
   0xd   :  { %166 = vmatpush.msra.mxu2 %v153_v15 }
   0xe   :  { %131 = vmatpush.bf16.msra.mxu1 %v244_v6 }
   0xf   :  { %167 = vmatpush.msra.mxu2 %v152_v16 }
  0x11   :  { %168 = vmatpush.msra.mxu2 %v151_v17 }
  0x12   :  { %132 = vmatpush.bf16.msra.mxu1 %v243_v7 }
  0x13   :  { %169 = vmatpush.msra.mxu2 %v150_v18 }
  0x15   :  { %170 = vmatpush.msra.mxu2 %v149_v19 }
  0x16   :  { %133 = vmatpush.bf16.msra.mxu1 %v242_v8 }
  0x17   :  { %171 = vmatpush.msra.mxu2 %v148_v20 }
  0x19   :  { %172 = vmatpush.msra.mxu2 %v147_v21 }
  0x1a   :  { %134 = vmatpush.bf16.msra.mxu1 %v241_v9 }
  0x1b   :  { %173 = vmatpush.msra.mxu2 %v146_v22 }
  0x1d   :  { %174 = vmatpush.msra.mxu2 %v145_v24 }
  0x1e   :  { %135 = vmatpush.bf16.msra.mxu1 %v240_v10 }
  0x1f   :  { %175 = vmatpush.msra.mxu2 %v144_v30 }
  0x21   :  { %176 = vmatpush.msra.mxu2 %v143_v31 }
  0x23   :  { %177 = vmatpush.msra.mxu2 %v142_v32 }
  0x82   :  { %v54_v25 = vpop.f32.mrf.mxu0 }
  0x83   :  { %v55_v26 = vadd.f32 %v248_v23, %v54_v25 }
  0x85   :  { %v58_v27 = vmax.f32 %v55_v26, 0.0 }
  0x87   :  { %v59_v28 = vpack.c.bf16 %v58_v27, %v58_v27 }
  0x89   :  { %136 = vmatmul.bf16.vlgmr.msra.gmra.mxu1 %v59_v28 }
  0x8a   :  { %v56_v29 = vpop.f32.mrf.mxu0 }
 0x106   :  { %v137_v34 = vpop.f32.mrf.mxu1 }
 0x107   :  { %v138_v35 = vadd.f32 %v249_v33, %v137_v34 }
 0x109   :  { %v141_v36 = vmax.f32 %v138_v35, 0.0 }
 0x10b   :  { %178 = vmatmul.f32.vlgmr.msra.gmra.mxu2 %v141_v36 }
 0x10e   :  { %v139_v37 = vpop.f32.mrf.mxu1 }
 0x18e   :  { %v179_v39 = vpop.f32.mrf.mxu2 }
 0x18f   :  { %v180_v40 = vadd.f32 %v250_v38, %v179_v39 }
 0x191   :  { %v183_v41 = vsel %vm182_vm1, %v180_v40, -inf }
 0x192   :  { %184 = vmax.xlane.f32.xlu0 %v183_v41 }
 0x205   :  { %v185_v42 = vpop.xlane.xlu0 %184 }
 0x206   :  { %v186_v43 = vsub.f32 %v180_v40, %v185_v42 }
 0x208   :  { %v187_v44 = vmul.f32 1.442695, %v186_v43 }
 0x20a   :  { %251 = vpow2.f32 %v187_v44 }
 0x210   :  { %v252_v45 = vpop.eup %251 }
 0x211   :  { %v189_v46 = vsel %vm182_vm1, %v252_v45, 0.0 }
 0x212   :  { %190 = vadd.xlane.f32.xlu0 %v189_v46 }
 0x285   :  { %v191_v47 = vpop.xlane.xlu0 %190 }
 0x286   :  { %253 = vrcp.f32 %v191_v47 }
 0x28c   :  { %v254_v48 = vpop.eup %253 }
 0x28d   :  { %v193_v49 = vmul.f32 %v254_v48, %v191_v47 }
 0x28f   :  { %v194_v50 = vsub.f32 2.0, %v193_v49 }
 0x291   :  { %v195_v51 = vmul.f32 %v254_v48, %v194_v50 }
 0x293   :  { %v196_v52 = vmul.f32 %v252_v45, %v195_v51 }
 0x295   :  { %197 = vst.msk [vmem:[%s395_s7] sm:$0xff] %vm182_vm1, %v196_v52 }

</bundles_post_ra>
